<compile_context>
chip_gen: v5e
topology: v5e:2x2
jax: 0.10.0
libtpu: 0.0.40
codegen_flags: <defaults>
</compile_context>

<pallas_src>
import jax
import jax.numpy as jnp
from jax.experimental import pallas as pl
from jax.experimental.pallas import tpu as pltpu


# ---------------------------------------------------------------------------
# Chip-aware budgets & tiling helpers
# ---------------------------------------------------------------------------
def _round_up(x, m):
    return (x + m - 1) // m * m


def _chip_budget():
    """Pick VMEM limit / tile ceilings from the TPU generation (conservative fallback)."""
    vmem_cap = None
    try:
        info = pltpu.get_tpu_info()
        vmem_cap = getattr(info, "vmem_capacity_bytes", None)
    except Exception:
        vmem_cap = None
    if vmem_cap is None:
        vmem_cap = 64 * 1024 * 1024  # conservative default = v7x per-TC VMEM
    if vmem_cap >= 96 * 1024 * 1024:
        # v5e / v6e: 128 MiB physical VMEM -> bigger tiles, higher scoped limit.
        return {"vmem_limit": 64 * 1024 * 1024, "tm_max": 1024, "k_whole": 2048}
    # v7x: 64 MiB per TensorCore -> keep the budget well under the physical cap.
    return {"vmem_limit": 48 * 1024 * 1024, "tm_max": 512, "k_whole": 1024}


def _n_tiles(N):
    """Lane-dense N tiling: pad N to a multiple of 256 and use tn in {512, 256}."""
    if N <= 128:
        return 128, 128
    N_pad = _round_up(N, 256)
    if N_pad % 512 == 0:
        return 512, N_pad
    return 256, N_pad


def _k_tiles(K, budget):
    """K tiling: keep K whole when it fits the chip budget, else 256/512 tiles."""
    if K <= budget["k_whole"]:
        return K, K
    K_pad = _round_up(K, 256)
    if K_pad % 512 == 0:
        return 512, K_pad
    return 256, K_pad


def _m_tiles(M, tm_max):
    """Row tiling: one 8-aligned tile when M fits, else largest tile with <=12.5% pad waste."""
    if M <= tm_max:
        tm = _round_up(max(M, 1), 8)
        return tm, tm
    for tm in (1024, 512, 256, 128, 64, 32, 16, 8):
        if tm > tm_max:
            continue
        M_pad = _round_up(M, tm)
        if (M_pad - M) * 8 <= M:  # padding waste <= 12.5%
            return tm, M_pad
    return 8, _round_up(M, 8)


# ---------------------------------------------------------------------------
# Kernels
# ---------------------------------------------------------------------------
def _prelu_linear_kernel_f32out(alpha_ref, x_ref, w_ref, b_ref, o_ref):
    # f32 output: accumulate directly into the output block (VMEM-resident across K).
    # alpha_ref: SMEM (1,) f32   -- shared PReLU slope
    # x_ref:     VMEM (tm, tk)   -- input tile
    # w_ref:     VMEM (tk, tn)   -- weight tile, pre-transposed to (in, out), bf16 or f32
    # b_ref:     VMEM (1, tn)    -- bias tile (f32)
    # o_ref:     VMEM (tm, tn)   -- f32 output / accumulator
    k = pl.program_id(2)

    @pl.when(k == 0)
    def _():
        o_ref[...] = jnp.zeros_like(o_ref)

    alpha = alpha_ref[0]
    x = x_ref[...]
    act = jnp.where(x > 0, x, alpha * x).astype(w_ref.dtype)   # PReLU, cast for the MXU
    o_ref[...] += jnp.dot(act, w_ref[...], preferred_element_type=jnp.float32)

    @pl.when(k == pl.num_programs(2) - 1)
    def _():
        o_ref[...] += b_ref[...]


def _prelu_linear_kernel_acc(alpha_ref, x_ref, w_ref, b_ref, o_ref, acc_ref):
    # Non-f32 output: keep a dedicated f32 accumulator scratch.
    k = pl.program_id(2)

    @pl.when(k == 0)
    def _():
        acc_ref[...] = jnp.zeros_like(acc_ref)

    alpha = alpha_ref[0]
    x = x_ref[...]
    act = jnp.where(x > 0, x, alpha * x).astype(w_ref.dtype)
    acc_ref[...] += jnp.dot(act, w_ref[...], preferred_element_type=jnp.float32)

    @pl.when(k == pl.num_programs(2) - 1)
    def _():
        o_ref[...] = (acc_ref[...] + b_ref[...]).astype(o_ref.dtype)


# ---------------------------------------------------------------------------
# Parameter preparation (one-time, OUTSIDE the hot path)
# ---------------------------------------------------------------------------
def prepare_params(weight, bias, compute_dtype=jnp.bfloat16):
    """PyTorch Linear params: weight (N, K), bias (N,) ->
       padded, transposed weight (K_pad, N_pad) in `compute_dtype` and f32 bias (1, N_pad)."""
    N, K = weight.shape
    budget = _chip_budget()
    _, K_pad = _k_tiles(K, budget)
    _, N_pad = _n_tiles(N)
    w_t = (jnp.zeros((K_pad, N_pad), compute_dtype)
           .at[:K, :N].set(weight.T.astype(compute_dtype)))
    b2d = jnp.zeros((1, N_pad), jnp.float32).at[:, :N].set(bias.astype(jnp.float32))
    return w_t, b2d


# ---------------------------------------------------------------------------
# Hot path
# ---------------------------------------------------------------------------
def kernel_linear_act_prepared(x, alpha, w_t, b2d, out_features):
    """x: (..., K); alpha: scalar; w_t: (K_pad, N_pad) pre-transposed/padded; b2d: (1, N_pad)."""
    budget = _chip_budget()
    K = x.shape[-1]
    K_pad, N_pad = w_t.shape
    lead = x.shape[:-1]
    x2d = x.reshape(-1, K)
    M = x2d.shape[0]

    tk, K_pad_chk = _k_tiles(K, budget)
    tn, N_pad_chk = _n_tiles(out_features)
    assert (K_pad_chk, N_pad_chk) == (K_pad, N_pad), "params not prepared for this shape"
    tm, M_pad = _m_tiles(M, budget["tm_max"])

    # Megacore: ensure the (i, j) parallel grid has >= 2 tiles so both v7x TensorCores get
    # work under ("parallel", "parallel", "arbitrary"); harmless on single-TC chips.
    if (M_pad // tm) * (N_pad // tn) < 2 and tm > 8:
        tm = _round_up((tm + 1) // 2, 8)
        M_pad = _round_up(M, tm)

    if M_pad != M or K_pad != K:
        x2d = jnp.zeros((M_pad, K_pad), x2d.dtype).at[:M, :K].set(x2d)

    alpha_arr = jnp.reshape(alpha, (1,)).astype(jnp.float32)
    grid = (M_pad // tm, N_pad // tn, K_pad // tk)

    out_dtype = x.dtype
    direct = out_dtype == jnp.float32
    kernel = _prelu_linear_kernel_f32out if direct else _prelu_linear_kernel_acc
    scratch = [] if direct else [pltpu.VMEM((tm, tn), jnp.float32)]

    out2d = pl.pallas_call(
        kernel,
        out_shape=jax.ShapeDtypeStruct((M_pad, N_pad), out_dtype),
        grid_spec=pltpu.PrefetchScalarGridSpec(
            num_scalar_prefetch=0,
            grid=grid,
            in_specs=[
                pl.BlockSpec(memory_space=pltpu.MemorySpace.SMEM),       # alpha scalar
                pl.BlockSpec((tm, tk), lambda i, j, k: (i, k)),          # x tile
                pl.BlockSpec((tk, tn), lambda i, j, k: (k, j)),          # weight tile (K, N)
                pl.BlockSpec((1, tn), lambda i, j, k: (0, j)),           # bias tile
            ],
            out_specs=pl.BlockSpec((tm, tn), lambda i, j, k: (i, j)),
            scratch_shapes=scratch,
        ),
        compiler_params=pltpu.CompilerParams(
            dimension_semantics=("parallel", "parallel", "arbitrary"),
            vmem_limit_bytes=budget["vmem_limit"],
        ),
    )(alpha_arr, x2d, w_t, b2d)

    out2d = out2d[:M, :out_features]
    return out2d.reshape(*lead, out_features)


def kernel_linear_act(x, alpha, weight, bias, compute_dtype=jnp.bfloat16):
    """Convenience wrapper taking PyTorch-layout params (weight: (N, K), bias: (N,)).
       In real use call prepare_params() once per model, not per step."""
    w_t, b2d = prepare_params(weight, bias, compute_dtype)
    return kernel_linear_act_prepared(x, alpha, w_t, b2d, weight.shape[0])


# ---------------------------------------------------------------------------
# Demo / correctness checks
# ---------------------------------------------------------------------------
if __name__ == "__main__":
    key = jax.random.PRNGKey(0)

    # --- small shape matching the module (batch=2, seq=8, input_ch=32, output_ch=64) ---
    batch, seq, input_ch, output_ch = 2, 8, 32, 64
    kx, kw, kb = jax.random.split(key, 3)
    x = jax.random.normal(kx, (batch, seq, input_ch), dtype=jnp.float32)
    alpha = jnp.float32(0.25)                                               # PReLU default init
    weight = jax.random.normal(kw, (output_ch, input_ch), jnp.float32) * 0.05  # (out, in)
    bias = jax.random.normal(kb, (output_ch,), jnp.float32) * 0.05

    act_ref = jnp.where(x > 0, x, alpha * x)
    ref_f32 = jnp.einsum("bsk,nk->bsn", act_ref, weight,
                         precision=jax.lax.Precision.HIGHEST) + bias

    # bf16 MXU path (default): compare against a bf16-rounded-operand reference (tight) and
    # against the full-f32 reference (loose, to confirm accuracy is in budget).
    out_bf16 = jax.block_until_ready(kernel_linear_act(x, alpha, weight, bias))
    ref_bf16 = jnp.einsum(
        "bsk,nk->bsn",
        act_ref.astype(jnp.bfloat16).astype(jnp.float32),
        weight.astype(jnp.bfloat16).astype(jnp.float32),
        precision=jax.lax.Precision.HIGHEST) + bias
    assert out_bf16.shape == (batch, seq, output_ch)
    assert jnp.allclose(out_bf16, ref_bf16, atol=1e-4, rtol=1e-4), "bf16-path mismatch"
    assert jnp.allclose(out_bf16, ref_f32, atol=5e-2, rtol=5e-2), "bf16-path accuracy out of budget"

    # strict-f32 path
    out_f32 = jax.block_until_ready(
        kernel_linear_act(x, alpha, weight, bias, compute_dtype=jnp.float32))
    assert jnp.allclose(out_f32, ref_f32, atol=1e-5, rtol=1e-5), "f32-path mismatch"

    # --- larger shape exercising M/N/K multi-tile paths, padding, and accumulation ---
    M2, K2, N2 = 520, 1536, 640
    k2x, k2w, k2b = jax.random.split(jax.random.PRNGKey(1), 3)
    x2 = jax.random.normal(k2x, (M2, K2), dtype=jnp.float32)
    w2 = jax.random.normal(k2w, (N2, K2), jnp.float32) * 0.02
    b2 = jax.random.normal(k2b, (N2,), jnp.float32) * 0.02

    w2_t, b2_2d = prepare_params(w2, b2)          # bf16 weights
    out2 = jax.block_until_ready(
        kernel_linear_act_prepared(x2, alpha, w2_t, b2_2d, N2))
    act2 = jnp.where(x2 > 0, x2, alpha * x2)
    ref2 = jnp.einsum(
        "mk,nk->mn",
        act2.astype(jnp.bfloat16).astype(jnp.float32),
        w2.astype(jnp.bfloat16).astype(jnp.float32),
        precision=jax.lax.Precision.HIGHEST) + b2
    assert out2.shape == (M2, N2)
    assert jnp.allclose(out2, ref2, atol=1e-2, rtol=1e-2), "multi-tile mismatch"

    print("KERNEL_OK")
</pallas_src>

<mosaic_0001>
module attributes {stable_mosaic.version = 11 : i64} {
  func.func @_prelu_linear_kernel_f32out(%arg0: i32, %arg1: i32, %arg2: i32, %arg3: memref<1xf32, #tpu.memory_space<smem>>, %arg4: memref<8x32xf32, #tpu.memory_space<vmem>>, %arg5: memref<32x128xbf16, #tpu.memory_space<vmem>>, %arg6: memref<1x128xf32, #tpu.memory_space<vmem>>, %arg7: memref<8x128xf32, #tpu.memory_space<vmem>>) attributes {dimension_semantics = [#tpu.dimension_semantics<parallel>, #tpu.dimension_semantics<parallel>, #tpu.dimension_semantics<arbitrary>], iteration_bounds = array<i64: 2, 1, 1>, scalar_prefetch = 0 : i64, scratch_operands = 0 : i64, tpu.core_type = #tpu.core_type<tc>, window_params = [{transform_indices = @transform_0, window_bounds = array<i64: 1>}, {transform_indices = @transform_1, window_bounds = array<i64: 8, 32>}, {transform_indices = @transform_2, window_bounds = array<i64: 32, 128>}, {transform_indices = @transform_3, window_bounds = array<i64: 1, 128>}, {transform_indices = @transform_4, window_bounds = array<i64: 8, 128>}]} {
    %c0_i32 = arith.constant 0 : i32
    %0 = arith.cmpi eq, %arg2, %c0_i32 : i32
    %1 = arith.extui %0 : i1 to i32
    %c0_i32_0 = arith.constant 0 : i32
    %2 = arith.cmpi ne, %1, %c0_i32_0 : i32
    scf.if %2 {
      %cst_12 = arith.constant 0.000000e+00 : f32
      %19 = vector.broadcast %cst_12 : f32 to vector<8x128xf32>
      %c0_13 = arith.constant 0 : index
      %c0_14 = arith.constant 0 : index
      %20 = vector.load %arg7[%c0_13, %c0_14] : memref<8x128xf32, #tpu.memory_space<vmem>>, vector<8x128xf32>
      tpu.vector_store %arg7[%c0_13, %c0_14], %19 {strides = array<i32>} : memref<8x128xf32, #tpu.memory_space<vmem>>, vector<8x128xf32>,
    } else {
    }
    %c0 = arith.constant 0 : index
    %3 = memref.load %arg3[%c0] : memref<1xf32, #tpu.memory_space<smem>>
    %c0_1 = arith.constant 0 : index
    %c0_2 = arith.constant 0 : index
    %4 = vector.load %arg4[%c0_1, %c0_2] : memref<8x32xf32, #tpu.memory_space<vmem>>, vector<8x32xf32>
    %cst = arith.constant 0.000000e+00 : f32
    %5 = vector.broadcast %cst : f32 to vector<8x32xf32>
    %6 = arith.cmpf ogt, %4, %5 : vector<8x32xf32>
    %7 = vector.broadcast %3 : f32 to vector<8x32xf32>
    %8 = arith.mulf %7, %4 : vector<8x32xf32>
    %9 = arith.select %6, %4, %8 : vector<8x32xi1>, vector<8x32xf32>
    %10 = arith.truncf %9 : vector<8x32xf32> to vector<8x32xbf16>
    %c0_3 = arith.constant 0 : index
    %c0_4 = arith.constant 0 : index
    %11 = vector.load %arg7[%c0_3, %c0_4] : memref<8x128xf32, #tpu.memory_space<vmem>>, vector<8x128xf32>
    %c0_5 = arith.constant 0 : index
    %c0_6 = arith.constant 0 : index
    %12 = vector.load %arg5[%c0_5, %c0_6] : memref<32x128xbf16, #tpu.memory_space<vmem>>, vector<32x128xbf16>
    %cst_7 = arith.constant dense<0.000000e+00> : vector<8x128xf32>
    %13 = tpu.matmul %10, %12, %cst_7 {dimension_numbers = #tpu.dot_dimension_numbers<[1], [0], [0], [1], [0, 0, 1, 1], [], []>} : vector<8x32xbf16>, vector<32x128xbf16>, vector<8x128xf32> -> vector<8x128xf32>
    %14 = arith.addf %11, %13 : vector<8x128xf32>
    %c0_8 = arith.constant 0 : index
    %c0_9 = arith.constant 0 : index
    %15 = vector.load %arg7[%c0_8, %c0_9] : memref<8x128xf32, #tpu.memory_space<vmem>>, vector<8x128xf32>
    tpu.vector_store %arg7[%c0_8, %c0_9], %14 {strides = array<i32>} : memref<8x128xf32, #tpu.memory_space<vmem>>, vector<8x128xf32>,
    %c0_i32_10 = arith.constant 0 : i32
    %16 = arith.cmpi eq, %arg2, %c0_i32_10 : i32
    %17 = arith.extui %16 : i1 to i32
    %c0_i32_11 = arith.constant 0 : i32
    %18 = arith.cmpi ne, %17, %c0_i32_11 : i32
    scf.if %18 {
      %c0_12 = arith.constant 0 : index
      %c0_13 = arith.constant 0 : index
      %19 = vector.load %arg7[%c0_12, %c0_13] : memref<8x128xf32, #tpu.memory_space<vmem>>, vector<8x128xf32>
      %c0_14 = arith.constant 0 : index
      %c0_15 = arith.constant 0 : index
      %20 = vector.load %arg6[%c0_14, %c0_15] : memref<1x128xf32, #tpu.memory_space<vmem>>, vector<1x128xf32>
      %21 = vector.broadcast %20 : vector<1x128xf32> to vector<8x128xf32>
      %22 = arith.addf %19, %21 : vector<8x128xf32>
      %c0_16 = arith.constant 0 : index
      %c0_17 = arith.constant 0 : index
      %23 = vector.load %arg7[%c0_16, %c0_17] : memref<8x128xf32, #tpu.memory_space<vmem>>, vector<8x128xf32>
      tpu.vector_store %arg7[%c0_16, %c0_17], %22 {strides = array<i32>} : memref<8x128xf32, #tpu.memory_space<vmem>>, vector<8x128xf32>,
    } else {
    }
    return
  }
  func.func @transform_0(%arg0: i32, %arg1: i32, %arg2: i32) -> i32 {
    %c0_i32 = arith.constant 0 : i32
    %c0_i32_0 = arith.constant 0 : i32
    return %c0_i32 : i32
  }
  func.func @transform_1(%arg0: i32, %arg1: i32, %arg2: i32) -> (i32, i32) {
    %c0_i32 = arith.constant 0 : i32
    return %arg0, %arg2 : i32, i32
  }
  func.func @transform_2(%arg0: i32, %arg1: i32, %arg2: i32) -> (i32, i32) {
    %c0_i32 = arith.constant 0 : i32
    return %arg2, %arg1 : i32, i32
  }
  func.func @transform_3(%arg0: i32, %arg1: i32, %arg2: i32) -> (i32, i32) {
    %c0_i32 = arith.constant 0 : i32
    %c0_i32_0 = arith.constant 0 : i32
    return %c0_i32, %arg1 : i32, i32
  }
  func.func @transform_4(%arg0: i32, %arg1: i32, %arg2: i32) -> (i32, i32) {
    %c0_i32 = arith.constant 0 : i32
    return %arg0, %arg1 : i32, i32
  }
}

</mosaic_0001>

<bundles_post_ra>
// kernel: tpu_custom_call.1
= control target key start
LH: loop header
LB: loop body
LE: loop exit
PB: predicated region body
PF: predicated region fallthrough
CT: control target
= control target key end

     0   :  { %s897_s0 = inlined_call_operand.<no memory space> [shape: f32[1], index: 0, kind: input, shape index: {}]   ;;  %s898_s1 = inlined_call_operand.hbm [shape: f32[16,32], index: 1, kind: input, shape index: {}]   ;;  %s899_s2 = inlined_call_operand.hbm [shape: bf16[32,128], index: 2, kind: input, shape index: {}]   ;;  %s900_s3 = inlined_call_operand.vmem [shape: f32[1,128], index: 3, kind: input, shape index: {}]   ;;  %s901_s4 = inlined_call_operand.hbm [shape: f32[16,128], index: 4, kind: output, shape index: {}]  }
   0x1   :  { %9 = sst [smem:[#allocation2]] %s897_s0 }
   0x2   :  { %10 = vsyncpa [#allocation4], 0 }
   0x3   :  { %12 = vsyncpa [#allocation4 + $0x1], 0 }
   0x4   :  { %13 = vsyncpa [#allocation7], 0 }
   0x5   :  { %14 = vsyncpa [#allocation5], 0 }
   0x6   :  { %16 = vsyncpa [#allocation5 + $0x1], 0  ;;  %s751_s17 = smov 0   ;;  %s753_s18 = smov 0  }
   0x7   :  { %s755_s19 = smov 0   ;;  %s757_s20 = smov 0  }
   0x8   :  { %s759_s21 = smov 0   ;;  %s761_s22 = smov 0  }
   0x9 LB: > { %s468_s0 = sadd.s32 4294967295, %s718_s22   ;;  %p470_p0 = scmp.ge.s32.totalorder %s718_s22, 1  ;;  %s718_s22 = sphi %s761_s22, %s22_s22   ;;  %s714_s21 = sphi %s759_s21, %s912_s21   ;;  %s710_s20 = sphi %s757_s20, %s911_s20   ;;  %s706_s19 = sphi %s755_s19, %s910_s19   ;;  %s702_s18 = sphi %s753_s18, %s909_s18   ;;  %s698_s17 = sphi %s751_s17, %s908_s17  }
   0xa   : > { %p783_p1 = scmp.eq.s32.totalorder %s468_s0, 0  ;;  %p177_p2 = scmp.lt.s32.totalorder %s718_s22, 3 }
   0xb   : > { %s195_s26 = sshll.u32 %s899_s2, 4  ;;  %s720_s28 = smov [#allocation6]   ;;  %s196_s26 = int_to_ptr.hbm [resolvable:$true] %s195_s26 }
   0xc   : > { %p791_p3 = pnand %p470_p0, %p177_p2  ;;  %s197_s29 = sshll.u32 %s720_s28, 4  ;;  %s198_s29 = int_to_ptr.vmem [resolvable:$true] %s197_s29 }
   0xd   : > { %p473_p6 = scmp.ge.s32.totalorder %s718_s22, 2  ;;  %s721_s30 = smov 64  }
   0xe   : > { %p503_p4 = pneg %p791_p3  ;;  %s722_s5 = smov 4  }
   0xf   : > { %s469_s6 = sadd.s32 4294967294, %s718_s22   ;;  %s41_s7 = sadd.s32 1, %s714_s21 }
  0x10   : > { %p504_p5 = pnand %p503_p4, %p783_p1  ;;  %s71_s8 = sadd.s32 1, %s706_s19 }
  0x11   : > { %p43_p7 = scmp.ge.s32.totalorder %s41_s7, 2  ;;  %p78_p8 = scmp.ne.s32.totalorder %s706_s19, %s702_s18 }
  0x12   : > { %506 = dma.hbm_to_vmem [thread:$0]  (!%p504_p5), %s196_s26, 256, %s198_s29, [#allocation7], %s721_s30, %s721_s30, %s722_s5  }
  0x13   : > { %p79_p9 = scmp.eq.s32.totalorder %s718_s22, 0  ;;  %p84_p10 = scmp.ne.s32.totalorder %s702_s18, %s698_s17 }
  0x14   : > { %s914_s7 = smov (%p43_p7, %s41_s7), 0  ;;  %p164_p13 = scmp.eq.s32.totalorder %s468_s0, 1 }
  0x15   : > { %p810_p11 = por %p79_p9, %p78_p8  ;;  %p816_p12 = por %p783_p1, %p84_p10 }
  0x16   : > { %s66_s11 = ssub.s32 %s714_s21, %s914_s7  ;;  %p170_p2 = scmp.eq.s32.totalorder %s469_s6, 1 }
  0x17   : > { %p69_p0 = scmp.eq.s32.totalorder %s66_s11, 0  ;;  %p822_p4 = por %p164_p13, %p78_p8 }
  0x18   : > { %p516_p5 = scmp.lt.s32.totalorder %s718_s22, 2  ;;  %p830_p7 = por %p170_p2, %p84_p10 }
  0x19   : > { %s828_s13 = scalar_select %p69_p0, %s706_s19, %s71_s8  }
  0x1a   : > { %s217_s15 = sand.u32 1, %s706_s19   ;;  %s475_s24 = sshll.u32 %s714_s21, 3 }
  0x1b   : > { %s474_s16 = sshll.u32 %s217_s15, 3  ;;  %s226_s0 = scalar_lea.hbm %s898_s1, %s475_s24 }
  0x1c   : > { %s221_s28 = scalar_lea.vmem [#allocation3], %s474_s16  ;;  %s228_s30 = sshll.u32 %s226_s0, 4  ;;  %s229_s30 = int_to_ptr.hbm [resolvable:$true] %s228_s30 }
  0x1d   : > { %s230_s29 = sshll.u32 %s221_s28, 4  ;;  %p508_p8 = pnand %p516_p5, %p810_p11  ;;  %s231_s29 = int_to_ptr.vmem [resolvable:$true] %s230_s29 }
  0x1e   : > { %s218_s5 = scalar_lea.sflag [#allocation4], %s217_s15  ;;  %239 = sbr.rel (%p791_p3) target bundleno = 184 (0xb8), region = 36 }
  0x1f   : > { %510 = dma.hbm_to_vmem [thread:$0]  (!%p508_p8), %s229_s30, 128, %s231_s29, %s218_s5  }
  0x20   : > { %s844_s6 = sand.u32 (!%p791_p3), 1, %s702_s18  }
  0x21   : > { %s477_s8 = sshll.u32 (!%p791_p3), %s844_s6, 3  ;;  %s242_s11 = scalar_lea.sflag (!%p791_p3), [#allocation4], %s844_s6 }
  0x22   : > { %s245_s16 = scalar_lea.vmem (!%p791_p3), [#allocation3], %s477_s8 }
  0x23   : > { %685 = dma.done.wait (%p816_p12), %s242_s11, 128  }
  0x24   : > { %687 = vsyncadd (%p816_p12), %s242_s11, 4294967168 }
  0x25   : > { %689 = dma.done.wait (%p783_p1), [#allocation7], 256  }
  0x26   : > { %691 = vsyncadd (%p783_p1), [#allocation7], 4294967040  ;;  %s289_s27 = sld [smem:[#allocation2]]  ;;  %v494_v0 = vld [vmem:[#allocation6 + $0x8] sm:$0xff]  ;;  %v290_v1 = vld [vmem:[%s245_s16] sm:$0xff]  ;;  %vm313_vm1 = vcmask 261120  }
  0x27   : > { %vm291_vm0 = vcmp.gt.f32.partialorder %v290_v1, 0.0  ;;  %323 = vmatpush.bf16.msra.mxu0 %v494_v0  ;;  %v493_v4 = vld [vmem:[#allocation6] sm:$0xff]  ;;  %s490_s9 = sshll.u32 %s710_s20, 3  ;;  %v571_v7 = vld [vmem:[%s900_s3] ss:$0 sm:$0xff]  ;;  %s278_s26 = scalar_lea.vmem [#allocation8], %s477_s8 }
  0x28   : > { %s354_s23 = scalar_lea.hbm %s901_s4, %s490_s9  ;;  %s356_s0 = sshll.u32 %s278_s26, 4  ;;  %s357_s0 = int_to_ptr.vmem [resolvable:$true] %s356_s0 }
  0x29   : > { %s358_s28 = sshll.u32 %s354_s23, 4  ;;  %s343_s29 = scalar_lea.sflag [#allocation5], %s844_s6  ;;  %s359_s28 = int_to_ptr.hbm [resolvable:$true] %s358_s28 }
  0x2a   : > { %s646_s30 = sshra.s32 %s359_s28, 4  ;;  %s652_s16 = scalar_lea.hbm %s901_s4, 16  ;;  %s647_s30 = int_to_ptr.hbm [resolvable:$true] %s646_s30 }
  0x2b   : > { %324 = vmatpush.bf16.msra.mxu0 %v493_v4  ;;  %s648_s20 = scalar_lea.hbm %s647_s30, 8  ;;  %p653_p10 = scmp.lt.s32.totalorder %s647_s30, %s901_s4 }
  0x2c   : > { %v292_v2 = vstv %s289_s27  ;;  %p649_p1 = scmp.ne.s32.totalorder %s647_s30, %s648_s20  ;;  %p654_p11 = scmp.lt.s32.totalorder %s652_s16, %s648_s20 }
  0x2d   : > { %v293_v3 = vmul.f32 %v292_v2, %v290_v1 }
  0x2e   : > { %p650_p3 = pnand %p649_p1, %p822_p4  ;;  %p655_p12 = por %p654_p11, %p653_p10 }
  0x2f   : > { %v294_v5 = vsel %vm291_vm0, %v290_v1, %v293_v3 }
  0x30   : > { %v295_v6 = vpack.c.bf16 %v294_v5, %v294_v5  ;;  %p651_p9 = pneg %p650_p3 }
  0x32   : > { %488 = vmatmul.msk.bf16.vlgmr.msra.gmra.mxu0 %vm313_vm1, %v295_v6  ;;  %p656_p13 = pnand %p655_p12, %p651_p9 }
  0xaf   : > { %v326_v8 = vpop.f32.mrf.mxu0 }
  0xb0   : > { %v340_v9 = vadd.f32 %v571_v7, %v326_v8 }
  0xb2   : > { %341 = vst [vmem:[%s278_s26] sm:$0xff] %v340_v9 }
  0xb3   : > { %659 = shalt.err (!%p656_p13)
}
  0xb4   : > { %501 = dma.vmem_to_hbm [thread:$0]  (%p822_p4), %s357_s0, 128, %s359_s28, %s343_s29  }
  0xb7   : > { %v328_v10 = vpop.f32.mrf.mxu0 }
  0xb8 PF: > { %s370_s6 = sand.u32 1, %s698_s17   ;;  %p512_p0 = pnand %p473_p6, %p830_p7 }
  0xb9   : > { %s371_s9 = scalar_lea.sflag [#allocation5], %s370_s6 }
  0xba   : > { %p513_p2 = pneg %p512_p0 }
  0xbc   : > { %693 = dma.done.wait (%p513_p2), %s371_s9, 128  }
  0xbd   : > { %695 = vsyncadd (%p513_p2), %s371_s9, 4294967168  ;;  %s22_s22 = sadd.s32 1, %s718_s22   ;;  %s908_s17 = smov %s702_s18 }
  0xbe   : > { %p19_p5 = scmp.ge.s32.totalorder %s22_s22, 4   ;;  %s909_s18 = smov %s706_s19 }
  0xbf   : > { %s910_s19 = smov %s828_s13  ;;  %s911_s20 = smov %s714_s21 }
  0xc0   : > { %s912_s21 = smov %s914_s7  ;;  %21 = sbr.rel (!%p19_p5) target bundleno = 9 (0x9), region = 97 }
  0xc5   :  { %377 = vsyncpa [#allocation4], 1 }
  0xc6   :  { %379 = vsyncpa [#allocation4 + $0x1], 1 }
  0xc7   :  { %380 = vsyncpa [#allocation7], 1 }
  0xc8   :  { %381 = vsyncpa [#allocation5], 1 }
  0xc9   :  { %383 = vsyncpa [#allocation5 + $0x1], 1 }

</bundles_post_ra>
